<compile_context>
chip_gen: v5e
topology: v5e:2x2
jax: 0.10.0
libtpu: 0.0.40
codegen_flags: <defaults>
</compile_context>

<pallas_src>
import math

import jax
import jax.numpy as jnp
from jax.experimental import pallas as pl
from jax.experimental.pallas import tpu as pltpu


def _ifft2_kernel(x_ref, a_ref, b_ref, o_ref):
    """One grid step: TB spectral slices -> TB real (nlat, nlon) fields.

    x_ref : (TB, 2*nlat, mmax)  rows = [Re ; Im] stacked along the lat axis
    a_ref : (2*nlat, 2*nlat)    block matrix [[Ac, -As], [As, Ac]]
    b_ref : (2*mmax, nlon)      block matrix [[Bc], [-Bs]]
    o_ref : (TB, nlat, nlon)
    """
    tb, two_nlat, _ = x_ref.shape
    nlat = two_nlat // 2
    nlon = b_ref.shape[1]

    a = a_ref[...]          # (2*nlat, 2*nlat), bf16
    b = b_ref[...]          # (2*mmax, nlon),  bf16

    # --- latitude transform: one fused block matmul per batch slice ---------
    # Y_t = A_big @ [xr_t ; xi_t]  ->  rows [:nlat] = Yr_t, rows [nlat:] = Yi_t
    zs = []
    for t in range(tb):
        y_t = jnp.dot(a, x_ref[t], preferred_element_type=jnp.float32)
        # repack (Yr_t | Yi_t) along lanes so the longitude transform below is
        # a single lane-dense matmul over all TB slices.
        zs.append(jnp.concatenate([y_t[:nlat, :], y_t[nlat:, :]], axis=-1))
    z = jnp.concatenate(zs, axis=0).astype(b.dtype)          # (TB*nlat, 2*mmax)

    # --- longitude transform: ONE big matmul (M = TB*nlat, N = nlon) --------
    out = jnp.dot(z, b, preferred_element_type=jnp.float32)  # (TB*nlat, nlon)
    o_ref[...] = out.reshape(tb, nlat, nlon).astype(o_ref.dtype)


def _build_dft_matrices(nlat, nlon, mmax, compute_dtype=jnp.bfloat16):
    """Fused inverse-DFT block matrices A_big (2L,2L) and B_comb (2M,nlon)."""
    # Integer modular angle reduction: cos(2*pi*((p*k) % n)/n) is exact even
    # when p*k is large (e.g. nlat=721, nlon=1440) where naive f32 p*k/n loses
    # significant digits.
    p = jnp.arange(nlat, dtype=jnp.int32)
    ang_lat = (2.0 * jnp.pi / nlat) * (jnp.outer(p, p) % nlat).astype(jnp.float32)
    s_lat = 1.0 / math.sqrt(nlat)
    ac = jnp.cos(ang_lat) * s_lat                       # (nlat, nlat)
    asn = jnp.sin(ang_lat) * s_lat
    a_big = jnp.block([[ac, -asn], [asn, ac]])          # (2*nlat, 2*nlat)

    m = jnp.arange(mmax, dtype=jnp.int32)
    q = jnp.arange(nlon, dtype=jnp.int32)
    ang_lon = (2.0 * jnp.pi / nlon) * (jnp.outer(m, q) % nlon).astype(jnp.float32)
    nyq = nlon // 2 if nlon % 2 == 0 else -1
    c = jnp.where((m == 0) | (m == nyq), 1.0, 2.0).astype(jnp.float32)
    s_lon = 1.0 / math.sqrt(nlon)
    bc = (c[:, None] * jnp.cos(ang_lon)) * s_lon        # (mmax, nlon)
    bs = (c[:, None] * jnp.sin(ang_lon)) * s_lon
    b_comb = jnp.concatenate([bc, -bs], axis=0)         # (2*mmax, nlon)

    return a_big.astype(compute_dtype), b_comb.astype(compute_dtype)


class InverseRealFFT2:
    """JAX/Pallas port of makani InverseRealFFT2 (no learnable parameters)."""

    def __init__(self, nlat, nlon, lmax=None, mmax=None, *,
                 compute_dtype=jnp.bfloat16, max_batch_block=8):
        self.nlat = nlat
        self.nlon = nlon
        self.lmax = min(lmax or nlat, nlat)
        self.mmax = min(mmax or nlon // 2 + 1, nlon // 2 + 1)
        self.truncate = not (self.lmax == self.nlat
                             and self.mmax == self.nlon // 2 + 1)
        self.lmax_high = math.ceil(self.lmax / 2)
        self.lmax_low = math.floor(self.lmax / 2)
        self.compute_dtype = compute_dtype
        self.max_batch_block = max_batch_block
        self._a_big, self._b_comb = _build_dft_matrices(
            self.nlat, self.nlon, self.mmax, compute_dtype)

    # glue: spectral-mode truncation / repacking (pure slicing + padding)
    def _prepare(self, x):
        xt = x[..., : self.mmax]
        if self.truncate:
            xth = xt[..., : self.lmax_high, :]
            xtl = xt[..., -self.lmax_low:, :]
            pad = [(0, 0)] * (xt.ndim - 2) + [(0, self.nlat - self.lmax), (0, 0)]
            xt = jnp.concatenate([jnp.pad(xth, pad), xtl], axis=-2)
        return xt  # (..., nlat, mmax) complex

    def __call__(self, x):
        nlat, nlon, mmax = self.nlat, self.nlon, self.mmax
        xt = self._prepare(x)
        batch_shape = xt.shape[:-2]
        bc_dim = math.prod(batch_shape)                      # static, no device sync

        # single packed real input: [Re ; Im] stacked along the lat axis
        xt = xt.reshape((bc_dim, nlat, mmax))
        xp = jnp.concatenate([jnp.real(xt), jnp.imag(xt)], axis=-2)
        xp = xp.astype(self.compute_dtype)                   # (bc, 2*nlat, mmax)

        # batch blocking: several slices per grid step; keep >= 2 grid steps
        # when possible so both v7x TensorCores get work.
        tb = min(bc_dim, self.max_batch_block)
        if bc_dim > 1:
            tb = min(tb, pl.cdiv(bc_dim, 2))
        grid = pl.cdiv(bc_dim, tb)
        bc_pad = grid * tb
        if bc_pad != bc_dim:
            xp = jnp.pad(xp, ((0, bc_pad - bc_dim), (0, 0), (0, 0)))

        out = pl.pallas_call(
            _ifft2_kernel,
            out_shape=jax.ShapeDtypeStruct((bc_pad, nlat, nlon), jnp.float32),
            grid=(grid,),
            in_specs=[
                pl.BlockSpec((tb, 2 * nlat, mmax), lambda i: (i, 0, 0)),
                pl.BlockSpec((2 * nlat, 2 * nlat), lambda i: (0, 0)),
                pl.BlockSpec((2 * mmax, nlon), lambda i: (0, 0)),
            ],
            out_specs=pl.BlockSpec((tb, nlat, nlon), lambda i: (i, 0, 0)),
            compiler_params=pltpu.CompilerParams(
                dimension_semantics=("parallel",)),
        )(xp, self._a_big, self._b_comb)

        out = out[:bc_dim]
        return out.reshape(batch_shape + (nlat, nlon))

    def reference(self, x):
        # pure-JAX reference (same semantics as the torch forward)
        xt = self._prepare(x)
        return jnp.fft.irfft2(xt, s=(self.nlat, self.nlon), axes=(-2, -1),
                              norm="ortho")


if __name__ == "__main__":
    B, C = 2, 4
    nlat, nlon = 16, 16
    lmax, mmax = 12, 7            # forces the truncation / repacking path

    key = jax.random.PRNGKey(0)
    kr, ki = jax.random.split(key)
    # spectral input: (B, C, lmax, nlon//2 + 1) complex64
    x = (jax.random.normal(kr, (B, C, lmax, nlon // 2 + 1), dtype=jnp.float32)
         + 1j * jax.random.normal(ki, (B, C, lmax, nlon // 2 + 1), dtype=jnp.float32)
         ).astype(jnp.complex64)

    # 1) exactness check of the fused DFT formulation in f32
    mod_f32 = InverseRealFFT2(nlat, nlon, lmax=lmax, mmax=mmax,
                              compute_dtype=jnp.float32)
    ref = jax.block_until_ready(mod_f32.reference(x))
    out32 = jax.block_until_ready(mod_f32(x))
    assert out32.shape == (B, C, nlat, nlon) and out32.dtype == jnp.float32
    assert jnp.allclose(out32, ref, atol=2e-3, rtol=2e-3), (
        float(jnp.max(jnp.abs(out32 - ref))))

    # 2) fast path: bf16 matrices/inputs with f32 accumulation (looser tol)
    mod = InverseRealFFT2(nlat, nlon, lmax=lmax, mmax=mmax)   # bf16 default
    out = jax.block_until_ready(mod(x))
    assert out.shape == (B, C, nlat, nlon) and out.dtype == jnp.float32
    max_err = float(jnp.max(jnp.abs(out - ref)))
    rel_l2 = float(jnp.linalg.norm(out - ref) / jnp.linalg.norm(ref))
    assert max_err < 0.15 and rel_l2 < 3e-2, (max_err, rel_l2)

    print("KERNEL_OK")
</pallas_src>

<mosaic_0001>
module attributes {stable_mosaic.version = 11 : i64} {
  func.func @_ifft2_kernel(%arg0: i32, %arg1: memref<4x32x7xf32, #tpu.memory_space<vmem>>, %arg2: memref<32x32xf32, #tpu.memory_space<vmem>>, %arg3: memref<14x16xf32, #tpu.memory_space<vmem>>, %arg4: memref<4x16x16xf32, #tpu.memory_space<vmem>>) attributes {dimension_semantics = [#tpu.dimension_semantics<parallel>], iteration_bounds = array<i64: 2>, scalar_prefetch = 0 : i64, scratch_operands = 0 : i64, tpu.core_type = #tpu.core_type<tc>, window_params = [{transform_indices = @transform_0, window_bounds = array<i64: 4, 32, 7>}, {pipeline_mode = #tpu.pipeline_mode<synchronous>, transform_indices = @transform_1, window_bounds = array<i64: 32, 32>}, {pipeline_mode = #tpu.pipeline_mode<synchronous>, transform_indices = @transform_2, window_bounds = array<i64: 14, 16>}, {transform_indices = @transform_3, window_bounds = array<i64: 4, 16, 16>}]} {
    %c0 = arith.constant 0 : index
    %c0_0 = arith.constant 0 : index
    %0 = vector.load %arg2[%c0, %c0_0] : memref<32x32xf32, #tpu.memory_space<vmem>>, vector<32x32xf32>
    %c0_1 = arith.constant 0 : index
    %c0_2 = arith.constant 0 : index
    %1 = vector.load %arg3[%c0_1, %c0_2] : memref<14x16xf32, #tpu.memory_space<vmem>>, vector<14x16xf32>
    %c0_3 = arith.constant 0 : index
    %c0_4 = arith.constant 0 : index
    %c0_5 = arith.constant 0 : index
    %2 = vector.load %arg1[%c0_3, %c0_4, %c0_5] : memref<4x32x7xf32, #tpu.memory_space<vmem>>, vector<1x32x7xf32>
    %3 = vector.shape_cast %2 : vector<1x32x7xf32> to vector<32x7xf32>
    %cst = arith.constant dense<0.000000e+00> : vector<32x7xf32>
    %4 = tpu.matmul %0, %3, %cst {dimension_numbers = #tpu.dot_dimension_numbers<[1], [0], [0], [1], [0, 0, 1, 1], [], []>} : vector<32x32xf32>, vector<32x7xf32>, vector<32x7xf32> -> vector<32x7xf32>
    %5 = vector.extract_strided_slice %4 {offsets = [0, 0], sizes = [16, 7], strides = [1, 1]} : vector<32x7xf32> to vector<16x7xf32>
    %6 = vector.extract_strided_slice %4 {offsets = [16, 0], sizes = [16, 7], strides = [1, 1]} : vector<32x7xf32> to vector<16x7xf32>
    %7 = tpu.concatenate %5, %6 in 1 : vector<16x7xf32>, vector<16x7xf32> -> vector<16x14xf32>
    %c1 = arith.constant 1 : index
    %c0_6 = arith.constant 0 : index
    %c0_7 = arith.constant 0 : index
    %8 = vector.load %arg1[%c1, %c0_6, %c0_7] : memref<4x32x7xf32, #tpu.memory_space<vmem>>, vector<1x32x7xf32>
    %9 = vector.shape_cast %8 : vector<1x32x7xf32> to vector<32x7xf32>
    %cst_8 = arith.constant dense<0.000000e+00> : vector<32x7xf32>
    %10 = tpu.matmul %0, %9, %cst_8 {dimension_numbers = #tpu.dot_dimension_numbers<[1], [0], [0], [1], [0, 0, 1, 1], [], []>} : vector<32x32xf32>, vector<32x7xf32>, vector<32x7xf32> -> vector<32x7xf32>
    %11 = vector.extract_strided_slice %10 {offsets = [0, 0], sizes = [16, 7], strides = [1, 1]} : vector<32x7xf32> to vector<16x7xf32>
    %12 = vector.extract_strided_slice %10 {offsets = [16, 0], sizes = [16, 7], strides = [1, 1]} : vector<32x7xf32> to vector<16x7xf32>
    %13 = tpu.concatenate %11, %12 in 1 : vector<16x7xf32>, vector<16x7xf32> -> vector<16x14xf32>
    %c2 = arith.constant 2 : index
    %c0_9 = arith.constant 0 : index
    %c0_10 = arith.constant 0 : index
    %14 = vector.load %arg1[%c2, %c0_9, %c0_10] : memref<4x32x7xf32, #tpu.memory_space<vmem>>, vector<1x32x7xf32>
    %15 = vector.shape_cast %14 : vector<1x32x7xf32> to vector<32x7xf32>
    %cst_11 = arith.constant dense<0.000000e+00> : vector<32x7xf32>
    %16 = tpu.matmul %0, %15, %cst_11 {dimension_numbers = #tpu.dot_dimension_numbers<[1], [0], [0], [1], [0, 0, 1, 1], [], []>} : vector<32x32xf32>, vector<32x7xf32>, vector<32x7xf32> -> vector<32x7xf32>
    %17 = vector.extract_strided_slice %16 {offsets = [0, 0], sizes = [16, 7], strides = [1, 1]} : vector<32x7xf32> to vector<16x7xf32>
    %18 = vector.extract_strided_slice %16 {offsets = [16, 0], sizes = [16, 7], strides = [1, 1]} : vector<32x7xf32> to vector<16x7xf32>
    %19 = tpu.concatenate %17, %18 in 1 : vector<16x7xf32>, vector<16x7xf32> -> vector<16x14xf32>
    %c3 = arith.constant 3 : index
    %c0_12 = arith.constant 0 : index
    %c0_13 = arith.constant 0 : index
    %20 = vector.load %arg1[%c3, %c0_12, %c0_13] : memref<4x32x7xf32, #tpu.memory_space<vmem>>, vector<1x32x7xf32>
    %21 = vector.shape_cast %20 : vector<1x32x7xf32> to vector<32x7xf32>
    %cst_14 = arith.constant dense<0.000000e+00> : vector<32x7xf32>
    %22 = tpu.matmul %0, %21, %cst_14 {dimension_numbers = #tpu.dot_dimension_numbers<[1], [0], [0], [1], [0, 0, 1, 1], [], []>} : vector<32x32xf32>, vector<32x7xf32>, vector<32x7xf32> -> vector<32x7xf32>
    %23 = vector.extract_strided_slice %22 {offsets = [0, 0], sizes = [16, 7], strides = [1, 1]} : vector<32x7xf32> to vector<16x7xf32>
    %24 = vector.extract_strided_slice %22 {offsets = [16, 0], sizes = [16, 7], strides = [1, 1]} : vector<32x7xf32> to vector<16x7xf32>
    %25 = tpu.concatenate %23, %24 in 1 : vector<16x7xf32>, vector<16x7xf32> -> vector<16x14xf32>
    %26 = tpu.concatenate %7, %13, %19, %25 in 0 : vector<16x14xf32>, vector<16x14xf32>, vector<16x14xf32>, vector<16x14xf32> -> vector<64x14xf32>
    %cst_15 = arith.constant dense<0.000000e+00> : vector<64x16xf32>
    %27 = tpu.matmul %26, %1, %cst_15 {dimension_numbers = #tpu.dot_dimension_numbers<[1], [0], [0], [1], [0, 0, 1, 1], [], []>} : vector<64x14xf32>, vector<14x16xf32>, vector<64x16xf32> -> vector<64x16xf32>
    %28 = vector.shape_cast %27 : vector<64x16xf32> to vector<4x16x16xf32>
    %c0_16 = arith.constant 0 : index
    %c0_17 = arith.constant 0 : index
    %c0_18 = arith.constant 0 : index
    %29 = vector.load %arg4[%c0_16, %c0_17, %c0_18] : memref<4x16x16xf32, #tpu.memory_space<vmem>>, vector<4x16x16xf32>
    tpu.vector_store %arg4[%c0_16, %c0_17, %c0_18], %28 {strides = array<i32>} : memref<4x16x16xf32, #tpu.memory_space<vmem>>, vector<4x16x16xf32>,
    return
  }
  func.func @transform_0(%arg0: i32) -> (i32, i32, i32) {
    %c0_i32 = arith.constant 0 : i32
    %c0_i32_0 = arith.constant 0 : i32
    %c0_i32_1 = arith.constant 0 : i32
    return %arg0, %c0_i32, %c0_i32_0 : i32, i32, i32
  }
  func.func @transform_1(%arg0: i32) -> (i32, i32) {
    %c0_i32 = arith.constant 0 : i32
    %c0_i32_0 = arith.constant 0 : i32
    %c0_i32_1 = arith.constant 0 : i32
    return %c0_i32, %c0_i32_0 : i32, i32
  }
  func.func @transform_2(%arg0: i32) -> (i32, i32) {
    %c0_i32 = arith.constant 0 : i32
    %c0_i32_0 = arith.constant 0 : i32
    %c0_i32_1 = arith.constant 0 : i32
    return %c0_i32, %c0_i32_0 : i32, i32
  }
  func.func @transform_3(%arg0: i32) -> (i32, i32, i32) {
    %c0_i32 = arith.constant 0 : i32
    %c0_i32_0 = arith.constant 0 : i32
    %c0_i32_1 = arith.constant 0 : i32
    return %arg0, %c0_i32, %c0_i32_0 : i32, i32, i32
  }
}

</mosaic_0001>

<bundles_post_ra>
// kernel: tpu_custom_call.1
= control target key start
LH: loop header
LB: loop body
LE: loop exit
PB: predicated region body
PF: predicated region fallthrough
CT: control target
= control target key end

     0   :  { %8 = vsyncpa [#allocation3], 0  ;;  %s877_s0 = inlined_call_operand.vmem [shape: f32[8,32,7], index: 0, kind: input, shape index: {}]   ;;  %s878_s1 = inlined_call_operand.vmem [shape: f32[32,32], index: 1, kind: input, shape index: {}]   ;;  %s879_s2 = inlined_call_operand.vmem [shape: f32[14,16], index: 2, kind: input, shape index: {}]   ;;  %s880_s3 = inlined_call_operand.hbm [shape: f32[8,16,16], index: 3, kind: output, shape index: {}]  }
   0x1   :  { %10 = vsyncpa [#allocation3 + $0x1], 0  ;;  %s717_s12 = smov 0   ;;  %s719_s13 = smov 0  }
   0x2   :  { %s721_s14 = smov 0   ;;  %s723_s15 = smov 0  }
   0x3 LB: > { %s738_s16 = sadd.s32 4294967295, %s692_s15   ;;  %s528_s17 = sadd.s32 4294967294, %s692_s15   ;;  %s692_s15 = sphi %s723_s15, %s886_s15   ;;  %s688_s14 = sphi %s721_s14, %s885_s14   ;;  %s684_s13 = sphi %s719_s13, %s884_s13   ;;  %s680_s12 = sphi %s717_s12, %s883_s12  }
   0x4   : > { %s742_s18 = sadd.s32 1, %s692_s15   ;;  %s91_s19 = sadd.s32 1, %s688_s14 }
   0x5   : > { %s88_s20 = ssub.s32 %s692_s15, %s742_s18  ;;  %p101_p0 = scmp.ne.s32.totalorder %s688_s14, %s684_s13 }
   0x6   : > { %p89_p1 = scmp.eq.s32.totalorder %s88_s20, 0  ;;  %p102_p2 = scmp.eq.s32.totalorder %s738_s16, 1 }
   0x7   : > { %p107_p3 = scmp.ne.s32.totalorder %s684_s13, %s680_s12  ;;  %p108_p4 = scmp.eq.s32.totalorder %s528_s17, 1 }
   0x8   : > { %s753_s21 = scalar_select %p89_p1, %s688_s14, %s91_s19  }
   0x9   : > { %p755_p5 = por %p102_p2, %p101_p0  ;;  %p759_p6 = por %p108_p4, %p107_p3 }
   0xa   : > { %p531_p7 = scmp.ge.s32.totalorder %s692_s15, 1  ;;  %p142_p8 = scmp.lt.s32.totalorder %s692_s15, 3 }
   0xc   : > { %p143_p9 = pnand %p531_p7, %p142_p8 }
   0xd   : > { %s533_s24 = sshll.u32 (!%p143_p9), %s738_s16, 2  ;;  %s694_s10 = smov (!%p143_p9), 7  }
   0xe   : > { %146 = sbr.rel (%p143_p9) target bundleno = 466 (0x1d2), region = 32  ;;  %p168_p10 = scmp.lt.s32.totalorder (!%p143_p9), %s533_s24, 7 }
   0xf   : > { %s581_s27 = sshll.u32 (!%p143_p9), %s738_s16, 6 }
  0x10   : > { %s462_s30 = scalar_lea.hbm (!%p143_p9), %s880_s3, %s581_s27 }
  0x11   : > { %s465_s5 = sshll.u32 (!%p143_p9), %s462_s30, 4  ;;  %s466_s5 = int_to_ptr.hbm [resolvable:$true] %s465_s5 }
  0x12   : > { %s644_s7 = sshra.s32 (!%p143_p9), %s466_s5, 4  ;;  %s645_s7 = int_to_ptr.hbm [resolvable:$true] %s644_s7 }
  0x13   : > { %s888_s24 = smov (!%p168_p10, %s533_s24), 7  ;;  %v175_v8 = vld [vmem:[%s878_s1] sm:$0xff]  ;;  %vm185_vm0 = vcmask 261120   ;;  %v177_v9 = vld [vmem:[%s878_s1 + $0x10] sm:$0xff]  ;;  %v176_v17 = vld [vmem:[%s878_s1 + $0x8] sm:$0xff]  ;;  %vm395_vm1 = vcmask 1045504   ;;  %p651_p0 = scmp.lt.s32.totalorder %s645_s7, %s880_s3 }
  0x14   : > { %s579_s25 = sshll.u32 %s888_s24, 5  ;;  %v178_v19 = vld [vmem:[%s878_s1 + $0x18] sm:$0xff]  ;;  %v180_v27 = vld [vmem:[%s879_s2 + $0x8] sm:$0x3f]  ;;  %v179_v37 = vld [vmem:[%s879_s2] sm:$0xff]  ;;  %vm235_vm2 = vcmask 56320  }
  0x15   : > { %s769_s28 = scalar_lea.vmem %s877_s0, %s579_s25  ;;  %564 = vmatpush.msk.msra.mxu0 %vm395_vm1, %v180_v27  ;;  %vm370_vm3 = vcmask 113664   ;;  %s164_s24 = sand.u32 1, %s684_s13   ;;  %vm440_vm4 = vcmask 130048  }
  0x16   : > { %v184_v0 = vld [vmem:[%s769_s28 + $0x18] sm:$0xff]  ;;  %v183_v2 = vld [vmem:[%s769_s28 + $0x10] sm:$0xff]  ;;  %v182_v4 = vld [vmem:[%s769_s28 + $0x8] sm:$0xff]  ;;  %s532_s25 = sshll.u32 %s164_s24, 6  ;;  %s450_s6 = scalar_lea.sflag [#allocation3], %s164_s24 }
  0x17   : > { %v559_v1 = vld [vmem:[%s769_s28 + $0x78] sm:$0xff]  ;;  %210 = vmatpush.msra.mxu1 %v184_v0  ;;  %582 = vmatpush.msra.mxu2 %v184_v0  ;;  %v558_v3 = vld [vmem:[%s769_s28 + $0x70] sm:$0xff]  ;;  %v557_v5 = vld [vmem:[%s769_s28 + $0x68] sm:$0xff]  ;;  %s166_s26 = scalar_lea.vmem [#allocation2], %s532_s25  ;;  %s646_s8 = scalar_lea.hbm %s645_s7, 64 }
  0x18   : > { %343 = vmatpush.msra.mxu3 %v559_v1  ;;  %v181_v6 = vld [vmem:[%s769_s28] sm:$0xff]  ;;  %v543_v10 = vld [vmem:[%s769_s28 + $0x38] sm:$0xff]  ;;  %v542_v12 = vld [vmem:[%s769_s28 + $0x30] sm:$0xff]  ;;  %414 = vmatpush.msra.mxu0 %v179_v37  ;;  %s463_s4 = sshll.u32 %s166_s26, 4  ;;  %p647_p11 = scmp.ne.s32.totalorder %s645_s7, %s646_s8  ;;  %s464_s4 = int_to_ptr.vmem [resolvable:$true] %s463_s4 }
  0x19   : > { %211 = vmatpush.msra.mxu1 %v183_v2  ;;  %583 = vmatpush.msra.mxu2 %v183_v2  ;;  %v556_v7 = vld [vmem:[%s769_s28 + $0x60] sm:$0xff]  ;;  %v551_v11 = vld [vmem:[%s769_s28 + $0x58] sm:$0xff]  ;;  %v550_v13 = vld [vmem:[%s769_s28 + $0x50] sm:$0xff] }
  0x1a   : > { %344 = vmatpush.msra.mxu3 %v558_v3  ;;  %v541_v14 = vld [vmem:[%s769_s28 + $0x28] sm:$0xff]  ;;  %v540_v16 = vld [vmem:[%s769_s28 + $0x20] sm:$0xff]  ;;  %p648_p12 = pnand %p647_p11, %p755_p5 }
  0x1b   : > { %212 = vmatpush.msra.mxu1 %v182_v4  ;;  %584 = vmatpush.msra.mxu2 %v182_v4  ;;  %v549_v15 = vld [vmem:[%s769_s28 + $0x48] sm:$0xff]  ;;  %v548_v18 = vld [vmem:[%s769_s28 + $0x40] sm:$0xff] }
  0x1c   : > { %345 = vmatpush.msra.mxu3 %v557_v5  ;;  %p649_p13 = pneg %p648_p12 }
  0x1d   : > { %213 = vmatpush.msra.mxu1 %v181_v6  ;;  %585 = vmatpush.msra.mxu2 %v181_v6 }
  0x1e   : > { %346 = vmatpush.msra.mxu3 %v556_v7  ;;  %536 = vmatmul.msk.f32.vlgmr.msra.gmra.mxu1 %vm185_vm0, %v175_v8 }
  0x1f   : > { %538 = vmatmul.msk.f32.vlgmr.msra.gmra.mxu2 %vm185_vm0, %v177_v9  ;;  %255 = vmatpush.msrb.mxu1 %v543_v10 }
  0x20   : > { %560 = vmatmul.msk.f32.vlgmr.msra.gmra.mxu3 %vm185_vm0, %v175_v8  ;;  %299 = vmatpush.msrb.mxu2 %v551_v11 }
  0x21   : > { %256 = vmatpush.msrb.mxu1 %v542_v12  ;;  %586 = vmatpush.msk.msrb.mxu3 %vm395_vm1, %v180_v27 }
  0x22   : > { %300 = vmatpush.msrb.mxu2 %v550_v13 }
  0x23   : > { %257 = vmatpush.msrb.mxu1 %v541_v14  ;;  %587 = vmatpush.msrb.mxu3 %v179_v37 }
  0x24   : > { %301 = vmatpush.msrb.mxu2 %v549_v15 }
  0x25   : > { %258 = vmatpush.msrb.mxu1 %v540_v16 }
  0x26   : > { %537 = vmatmul.msk.f32.gmra.mxu1 %vm185_vm0, %v176_v17  ;;  %302 = vmatpush.msrb.mxu2 %v548_v18 }
  0x27   : > { %539 = vmatmul.msk.f32.gmra.mxu2 %vm185_vm0, %v178_v19 }
  0x28   : > { %561 = vmatmul.msk.f32.gmra.mxu3 %vm185_vm0, %v176_v17 }
  0x2e   : > { %544 = vmatmul.msk.f32.vlgmr.msrb.gmra.mxu1 %vm185_vm0, %v175_v8 }
  0x2f   : > { %552 = vmatmul.msk.f32.vlgmr.msrb.gmra.mxu2 %vm185_vm0, %v175_v8 }
  0x30   : > { %562 = vmatmul.msk.f32.gmra.mxu3 %vm185_vm0, %v177_v9 }
  0x36   : > { %545 = vmatmul.msk.f32.gmra.mxu1 %vm185_vm0, %v176_v17 }
  0x37   : > { %553 = vmatmul.msk.f32.gmra.mxu2 %vm185_vm0, %v176_v17 }
  0x38   : > { %563 = vmatmul.msk.f32.gmra.mxu3 %vm185_vm0, %v178_v19 }
  0x3e   : > { %546 = vmatmul.msk.f32.gmra.mxu1 %vm185_vm0, %v177_v9 }
  0x3f   : > { %554 = vmatmul.msk.f32.gmra.mxu2 %vm185_vm0, %v177_v9 }
  0x46   : > { %547 = vmatmul.msk.f32.gmra.mxu1 %vm185_vm0, %v178_v19 }
  0x47   : > { %555 = vmatmul.msk.f32.gmra.mxu2 %vm185_vm0, %v178_v19 }
  0x9b   : > { %v215_v20 = vpop.f32.mrf.mxu1 }
  0xa2   : > { %v221_v21 = vpop.f32.mrf.mxu2 }
  0xa3   : > { %v348_v22 = vpop.f32.mrf.mxu3  ;;  %229 = vrot.lane.b32.xlu0 %v221_v21, %s694_s10  ;;  %v218_v23 = vpop.f32.mrf.mxu1 }
  0xaa   : > { %v224_v24 = vpop.f32.mrf.mxu2 }
  0xab   : > { %v351_v25 = vpop.f32.mrf.mxu3  ;;  %231 = vrot.lane.b32.xlu0 %v224_v24, %s694_s10  ;;  %v260_v26 = vpop.f32.mrf.mxu1 }
  0xb2   : > { %v304_v28 = vpop.f32.mrf.mxu2 }
  0xb3   : > { %v354_v29 = vpop.f32.mrf.mxu3  ;;  %v263_v30 = vpop.f32.mrf.mxu1 }
  0xba   : > { %v307_v31 = vpop.f32.mrf.mxu2 }
  0xbb   : > { %v357_v32 = vpop.f32.mrf.mxu3  ;;  %v266_v33 = vpop.f32.mrf.mxu1 }
  0xbc   : > { %364 = vrot.lane.b32.xlu0 %v357_v32, %s694_s10  ;;  %274 = vrot.lane.b32.xlu1 %v266_v33, %s694_s10 }
  0xc2   : > { %v310_v34 = vpop.f32.mrf.mxu2 }
  0xc3   : > { %318 = vrot.lane.b32.xlu2 %v310_v34, %s694_s10  ;;  %v269_v35 = vpop.f32.mrf.mxu1 }
  0xc4   : > { %276 = vrot.lane.b32.xlu1 %v269_v35, %s694_s10 }
  0xca   : > { %v313_v36 = vpop.f32.mrf.mxu2 }
  0xcb   : > { %320 = vrot.lane.b32.xlu2 %v313_v36, %s694_s10 }
  0xcc   : > { %362 = vrot.lane.b32.xlu1 %v354_v29, %s694_s10  ;;  %s650_s10 = scalar_lea.hbm %s880_s3, 128 }
  0xcd   : > { %p652_p1 = scmp.lt.s32.totalorder %s650_s10, %s646_s8 }
  0xcf   : > { %p653_p2 = por %p652_p1, %p651_p0 }
  0xd1   : > { %p654_p3 = pnand %p653_p2, %p649_p13 }
 0x115   : > { %v230_v38 = vpop.permute.xlu0 %229 }
 0x116   : > { %v236_v39 = vsel %vm235_vm2, %v215_v20, %v230_v38 }
 0x117   : > { %565 = vmatmul.msk.f32.vlgmr.msra.gmra.mxu0 %vm370_vm3, %v236_v39 }
 0x11d   : > { %v232_v40 = vpop.permute.xlu0 %231  ;;  %v319_v48 = vpop.permute.xlu2 %318 }
 0x11e   : > { %v237_v41 = vsel %vm235_vm2, %v218_v23, %v232_v40  ;;  %v324_v49 = vsel %vm235_vm2, %v304_v28, %v319_v48 }
 0x11f   : > { %566 = vmatmul.msk.f32.gmra.mxu0 %vm370_vm3, %v237_v41 }
 0x125   : > { %v321_v50 = vpop.permute.xlu2 %320 }
 0x126   : > { %v325_v51 = vsel %vm235_vm2, %v307_v31, %v321_v50 }
 0x12e   : > { %v365_v42 = vpop.permute.xlu0 %364  ;;  %v275_v43 = vpop.permute.xlu1 %274 }
 0x12f   : > { %v369_v44 = vsel %vm235_vm2, %v351_v25, %v365_v42  ;;  %v280_v45 = vsel %vm235_vm2, %v260_v26, %v275_v43 }
 0x130   : > { %572 = vmatmul.msk.f32.vlgmr.msrb.gmra.mxu3 %vm370_vm3, %v369_v44  ;;  %567 = vmatmul.msk.f32.gmra.mxu0 %vm370_vm3, %v280_v45 }
 0x136   : > { %v277_v46 = vpop.permute.xlu1 %276 }
 0x137   : > { %v281_v47 = vsel %vm235_vm2, %v263_v30, %v277_v46 }
 0x138   : > { %568 = vmatmul.msk.f32.gmra.mxu0 %vm370_vm3, %v281_v47 }
 0x13e   : > { %v363_v52 = vpop.permute.xlu1 %362 }
 0x13f   : > { %v368_v53 = vsel %vm235_vm2, %v348_v22, %v363_v52 }
 0x140   : > { %569 = vmatmul.msk.f32.gmra.mxu0 %vm370_vm3, %v324_v49 }
 0x148   : > { %570 = vmatmul.msk.f32.gmra.mxu0 %vm370_vm3, %v325_v51 }
 0x150   : > { %571 = vmatmul.msk.f32.gmra.mxu0 %vm370_vm3, %v368_v53 }
 0x194   : > { %v416_v54 = vpop.f32.mrf.mxu0 }
 0x195   : > { %441 = vst.msk [vmem:[%s166_s26] sm:$0xff] %vm440_vm4, %v416_v54 }
 0x19c   : > { %v419_v55 = vpop.f32.mrf.mxu0 }
 0x19d   : > { %442 = vst.msk [vmem:[%s166_s26 + $0x8] sm:$0xff] %vm440_vm4, %v419_v55 }
 0x1ad   : > { %v422_v56 = vpop.f32.mrf.mxu0 }
 0x1ae   : > { %443 = vst.msk [vmem:[%s166_s26 + $0x10] sm:$0xff] %vm440_vm4, %v422_v56 }
 0x1b3   : > { %v437_v57 = vpop.f32.mrf.mxu3 }
 0x1b4   : > { %448 = vst.msk [vmem:[%s166_s26 + $0x38] sm:$0xff] %vm440_vm4, %v437_v57 }
 0x1b5   : > { %v425_v58 = vpop.f32.mrf.mxu0 }
 0x1b6   : > { %444 = vst.msk [vmem:[%s166_s26 + $0x18] sm:$0xff] %vm440_vm4, %v425_v58 }
 0x1bd   : > { %v428_v59 = vpop.f32.mrf.mxu0 }
 0x1be   : > { %445 = vst.msk [vmem:[%s166_s26 + $0x20] sm:$0xff] %vm440_vm4, %v428_v59 }
 0x1c5   : > { %v431_v60 = vpop.f32.mrf.mxu0 }
 0x1c6   : > { %446 = vst.msk [vmem:[%s166_s26 + $0x28] sm:$0xff] %vm440_vm4, %v431_v60 }
 0x1cd   : > { %v434_v61 = vpop.f32.mrf.mxu0 }
 0x1ce   : > { %447 = vst.msk [vmem:[%s166_s26 + $0x30] sm:$0xff] %vm440_vm4, %v434_v61 }
 0x1cf   : > { %657 = shalt.err (!%p654_p3)
}
 0x1d0   : > { %s695_s19 = smov 128   ;;  %s696_s20 = smov 8  }
 0x1d1   : > { %588 = dma.vmem_to_hbm [thread:$0]  (%p755_p5), %s464_s4, 1024, %s466_s5, %s450_s6, %s695_s19, %s695_s19, %s696_s20  }
 0x1d2 PF: > { %p594_p4 = scmp.ge.s32.totalorder %s692_s15, 2  ;;  %s480_s24 = sand.u32 1, %s680_s12  }
 0x1d3   : > { %s481_s25 = scalar_lea.sflag [#allocation3], %s480_s24 }
 0x1d4   : > { %p591_p7 = pnand %p594_p4, %p759_p6 }
 0x1d6   : > { %p592_p8 = pneg %p591_p7 }
 0x1d8   : > { %675 = dma.done.wait (%p592_p8), %s481_s25, 1024  }
 0x1d9   : > { %677 = vsyncadd (%p592_p8), %s481_s25, 4294966272  ;;  %p13_p9 = scmp.ge.s32.totalorder %s742_s18, 4   ;;  %s883_s12 = smov %s684_s13 }
 0x1da   : > { %s884_s13 = smov %s688_s14  ;;  %s885_s14 = smov %s753_s21 }
 0x1db   : > { %s886_s15 = smov %s742_s18  ;;  %15 = sbr.rel (!%p13_p9) target bundleno = 3 (0x3), region = 70 }
 0x1e0   :  { %487 = vsyncpa [#allocation3], 1 }
 0x1e1   :  { %489 = vsyncpa [#allocation3 + $0x1], 1 }

</bundles_post_ra>
